<compile_context>
chip_gen: v7x
topology: tpu7x:2x2x1
jax: 0.10.0
libtpu: 0.0.40
codegen_flags: <defaults>
</compile_context>

<pallas_src>
import functools

import jax
import jax.numpy as jnp
from jax.experimental import pallas as pl
from jax.experimental.pallas import tpu as pltpu


def _round_up(x, m):
    return (x + m - 1) // m * m


def _sims_tile_kernel(img_ref, capT_ref, sel_ref, thres_ref, out_ref, *, tb, f_pad):
    """One (B-tile, L-tile) step: sims -> frag-max -> word-sum -> thres scale.

    img_ref  : (tb*f_pad, K)       bf16   image fragments for this B tile
    capT_ref : (K, tl*w_pad)       bf16   caption words (canonical K-major RHS)
    sel_ref  : (tl*w_pad, tl)      f32    0/1 word->caption selector (precomputed)
    thres_ref: (1, tl)             f32    1/(cap_l + n) for this L tile
    out_ref  : (tb, tl)            f32    thres-scaled sims tile
    """
    # Fragment/word similarities in one lane-dense bf16 MXU matmul, f32 accum:
    # s[b*f_pad + i, l*w_pad + j] = <img[b, i], cap[l, j]>
    s = jnp.dot(img_ref[...], capT_ref[...],
                preferred_element_type=jnp.float32)          # (tb*f_pad, tl*w_pad) f32

    # max over image fragments: split only the sublane axis (f_pad is a multiple
    # of 8 so the reshape stays tile-aligned); lane axis untouched.
    frag_max = jnp.max(s.reshape(tb, f_pad, s.shape[1]), axis=1)   # (tb, tl*w_pad)

    # sum over (real) words per caption via the 0/1 selector matmul. Kept in f32:
    # selector entries are exact and this dot is negligible next to the big one.
    sims = jnp.dot(frag_max, sel_ref[...],
                   preferred_element_type=jnp.float32)       # (tb, tl)

    # scale by caption threshold 1/(cap_l + n)
    out_ref[...] = sims * thres_ref[...]


def _pick_tiles(b_pad, f_pad, l_pad, w_pad, k, budget_bytes):
    """Heuristic tile sizes.  tl is lane-clean (full L or a multiple of 128);
    tb is a multiple of 8.  Budget covers the bf16 operand tile plus the f32
    similarity tile; double-buffering headroom is left to the VMEM limit."""
    def cap_bytes(t):                       # bf16 caption tile
        return t * w_pad * k * 2

    tl = l_pad
    if cap_bytes(l_pad) > budget_bytes and l_pad % 128 == 0:
        cands = [t for t in range(128, l_pad, 128)
                 if l_pad % t == 0 and cap_bytes(t) <= budget_bytes]
        tl = max(cands) if cands else 128

    def b_bytes(t):                         # bf16 img tile + f32 s tile share
        return t * f_pad * (k * 2 + tl * w_pad * 4)

    tb, t = None, 8
    while t <= b_pad:
        if b_pad % t == 0 and b_bytes(t) <= budget_bytes:
            tb = t
        t += 8
    if tb is None:
        tb = 8                              # b_pad is always a multiple of 8
    return tb, tl


def laenen_loss_forward(epoch, img_emb, cap_emb, cap_l, *, margin, n,
                        switch=None, beta=None, gamma=None,
                        kmeans_features=None, kmeans_emb=None,
                        cluster_loss=False,
                        tb=None, tl=None,
                        tile_budget_bytes=4 * 1024 * 1024):
    """JAX/Pallas equivalent of LaenenLoss.forward (cluster_loss=False path)."""
    del epoch, switch, beta, gamma, kmeans_features, kmeans_emb
    if cluster_loss:
        # TODO(synk): cluster_loss=True needs sklearn KMeans.predict /
        # cluster_centers_ (host-side) and an undefined `features` arg in the
        # original forward; no Pallas equivalent, so it is not implemented.
        raise NotImplementedError("cluster_loss branch is not supported")

    f32, bf16 = jnp.float32, jnp.bfloat16
    B, F, K = img_emb.shape
    L, W, _ = cap_emb.shape
    if B != L:
        # the reference c_glob takes torch.diagonal(sims) and expands it to both
        # (B, L) shapes, which only makes sense for square sims.
        raise ValueError("LaenenLoss.c_glob requires batch_size == n_caption")

    # --- pad F/W (and B/L) to multiples of 8 so reshapes stay tile-aligned ---
    F_pad, W_pad = _round_up(F, 8), _round_up(W, 8)
    B_pad, L_pad = _round_up(B, 8), _round_up(L, 8)

    img = img_emb.astype(f32)
    cap = cap_emb.astype(f32)
    if F_pad != F:
        # replicate a real fragment: duplicates never change the fragment max
        img = jnp.concatenate(
            [img, jnp.broadcast_to(img[:, :1, :], (B, F_pad - F, K))], axis=1)
    if B_pad != B:
        img = jnp.concatenate([img, jnp.zeros((B_pad - B, F_pad, K), f32)], axis=0)
    if W_pad != W:
        # zero word embeddings; the selector masks them out of the word-sum
        cap = jnp.concatenate([cap, jnp.zeros((L, W_pad - W, K), f32)], axis=1)
    if L_pad != L:
        cap = jnp.concatenate([cap, jnp.zeros((L_pad - L, W_pad, K), f32)], axis=0)

    # --- bf16 MXU operands in canonical (M,K) / (K,N) layouts ----------------
    img_flat = img.reshape(B_pad * F_pad, K).astype(bf16)            # (B*F, K)
    capT = cap.reshape(L_pad * W_pad, K).T.astype(bf16)              # (K, L*W)

    # --- static 0/1 word->caption selector, built once by XLA ----------------
    # sel[l*W_pad + j, l'] = 1 iff l == l' and j is a real (unpadded) word.
    l_idx = jnp.arange(L_pad)[:, None, None]
    w_idx = jnp.arange(W_pad)[None, :, None]
    c_idx = jnp.arange(L_pad)[None, None, :]
    sel = jnp.where((l_idx == c_idx) & (w_idx < W), 1.0, 0.0).astype(f32)
    sel = sel.reshape(L_pad * W_pad, L_pad)

    # --- caption thresholds 1/(cap_l + n) ------------------------------------
    cap_l_f = cap_l.astype(f32)
    if L_pad != L:
        cap_l_f = jnp.concatenate([cap_l_f, jnp.zeros((L_pad - L,), f32)])
    thres = (1.0 / (cap_l_f + float(n))).reshape(1, L_pad)

    # --- tile sizes -----------------------------------------------------------
    auto_tb, auto_tl = _pick_tiles(B_pad, F_pad, L_pad, W_pad, K, tile_budget_bytes)
    tb = auto_tb if tb is None else int(tb)
    tl = auto_tl if tl is None else int(tl)
    if B_pad % tb or (tb % 8 and tb != B_pad):
        raise ValueError(f"invalid batch tile tb={tb} for B_pad={B_pad}")
    if L_pad % tl or (tl % 128 and tl != L_pad):
        raise ValueError(f"invalid caption tile tl={tl} for L_pad={L_pad}")
    nb, nl = B_pad // tb, L_pad // tl

    flops = int(2 * B_pad * F_pad * K * L_pad * W_pad        # similarity matmul
                + 2 * B_pad * L_pad * W_pad * tl)            # selector matmul
    bytes_accessed = int(
        img_flat.size * 2 * nl + capT.size * 2 * nb
        + sel.size * 4 * nb + thres.size * 4 * nb + B_pad * L_pad * 4)

    sims_pad = pl.pallas_call(
        functools.partial(_sims_tile_kernel, tb=tb, f_pad=F_pad),
        out_shape=jax.ShapeDtypeStruct((B_pad, L_pad), f32),
        grid=(nb, nl),
        in_specs=[
            pl.BlockSpec((tb * F_pad, K), lambda i, j: (i, 0)),     # img tile
            pl.BlockSpec((K, tl * W_pad), lambda i, j: (0, j)),     # cap tile (K-major)
            pl.BlockSpec((tl * W_pad, tl), lambda i, j: (j, j)),    # selector diag block
            pl.BlockSpec((1, tl), lambda i, j: (0, j)),             # thres tile
        ],
        out_specs=pl.BlockSpec((tb, tl), lambda i, j: (i, j)),
        compiler_params=pltpu.CompilerParams(
            dimension_semantics=("parallel", "parallel"),
            vmem_limit_bytes=32 * 1024 * 1024,
        ),
        cost_estimate=pl.CostEstimate(
            flops=flops, transcendentals=0, bytes_accessed=bytes_accessed),
    )(img_flat, capT, sel, thres)

    # --- tiny c_glob epilogue in plain JAX (keeps the grid fully parallel) ----
    sims = sims_pad[:B, :L]
    diag = jnp.diagonal(sims)
    score_image = jnp.maximum(sims - diag[:, None] + margin, 0.0)
    score_cap = jnp.maximum(sims - diag[None, :] + margin, 0.0)
    return jnp.sum(score_cap) + jnp.sum(score_image)


def _reference_loss(img_emb, cap_emb, cap_l, margin, n):
    """Pure-jnp re-implementation of the PyTorch forward (cluster_loss=False)."""
    sims = jnp.einsum("bik,ljk->blij", img_emb, cap_emb,
                      precision=jax.lax.Precision.HIGHEST)
    sims = jnp.max(sims, axis=2)
    sims = jnp.sum(sims, axis=2)
    thres = 1.0 / (cap_l + n).astype(jnp.float32)
    sims = sims * thres[None, :]
    diag = jnp.diagonal(sims)
    score_image = jnp.maximum(sims - diag[:, None] + margin, 0.0)
    score_cap = jnp.maximum(sims - diag[None, :] + margin, 0.0)
    return jnp.sum(score_cap) + jnp.sum(score_image)


if __name__ == "__main__":
    key = jax.random.PRNGKey(0)
    k1, k2, k3 = jax.random.split(key, 3)

    # small shapes; F=12 and W=10 deliberately exercise the F/W padding paths
    B, L, F, W, K = 16, 16, 12, 10, 64
    margin, n, switch, beta, gamma = 0.2, 10, 5, 0.5, 1.0

    img_emb = jax.random.normal(k1, (B, F, K), dtype=jnp.float32)
    cap_emb = jax.random.normal(k2, (L, W, K), dtype=jnp.float32)
    cap_l = jax.random.randint(k3, (L,), 3, W + 1)

    loss = laenen_loss_forward(0, img_emb, cap_emb, cap_l,
                               margin=margin, n=n, switch=switch,
                               beta=beta, gamma=gamma, cluster_loss=False,
                               tb=8)   # force a multi-step grid on the batch axis
    loss = jax.block_until_ready(loss)

    ref = jax.block_until_ready(_reference_loss(img_emb, cap_emb, cap_l, margin, n))
    # bf16 MXU operands (f32 accumulation) vs an f32 reference: loose tolerance.
    assert jnp.allclose(loss, ref, rtol=3e-2, atol=1e-1), (loss, ref)
    print("KERNEL_OK")
</pallas_src>

<mosaic_0001>
module attributes {stable_mosaic.version = 11 : i64} {
  func.func @_sims_tile_kernel(%arg0: i32, %arg1: i32, %arg2: memref<128x64xbf16, #tpu.memory_space<vmem>>, %arg3: memref<64x256xbf16, #tpu.memory_space<vmem>>, %arg4: memref<256x16xf32, #tpu.memory_space<vmem>>, %arg5: memref<1x16xf32, #tpu.memory_space<vmem>>, %arg6: memref<8x16xf32, #tpu.memory_space<vmem>>) attributes {dimension_semantics = [#tpu.dimension_semantics<parallel>, #tpu.dimension_semantics<parallel>], iteration_bounds = array<i64: 2, 1>, scalar_prefetch = 0 : i64, scratch_operands = 0 : i64, tpu.core_type = #tpu.core_type<tc>, window_params = [{transform_indices = @transform_0, window_bounds = array<i64: 128, 64>}, {transform_indices = @transform_1, window_bounds = array<i64: 64, 256>}, {transform_indices = @transform_2, window_bounds = array<i64: 256, 16>}, {transform_indices = @transform_3, window_bounds = array<i64: 1, 16>}, {transform_indices = @transform_4, window_bounds = array<i64: 8, 16>}]} {
    %c0 = arith.constant 0 : index
    %c0_0 = arith.constant 0 : index
    %0 = vector.load %arg2[%c0, %c0_0] : memref<128x64xbf16, #tpu.memory_space<vmem>>, vector<128x64xbf16>
    %c0_1 = arith.constant 0 : index
    %c0_2 = arith.constant 0 : index
    %1 = vector.load %arg3[%c0_1, %c0_2] : memref<64x256xbf16, #tpu.memory_space<vmem>>, vector<64x256xbf16>
    %cst = arith.constant dense<0.000000e+00> : vector<128x256xf32>
    %2 = tpu.matmul %0, %1, %cst {dimension_numbers = #tpu.dot_dimension_numbers<[1], [0], [0], [1], [0, 0, 1, 1], [], []>} : vector<128x64xbf16>, vector<64x256xbf16>, vector<128x256xf32> -> vector<128x256xf32>
    %3 = vector.shape_cast %2 : vector<128x256xf32> to vector<8x16x256xf32>
    %cst_3 = arith.constant dense<0xFF800000> : vector<8x256xf32>
    %4 = vector.multi_reduction <maximumf>, %3, %cst_3 [1] : vector<8x16x256xf32> to vector<8x256xf32>
    %c0_4 = arith.constant 0 : index
    %c0_5 = arith.constant 0 : index
    %5 = vector.load %arg4[%c0_4, %c0_5] : memref<256x16xf32, #tpu.memory_space<vmem>>, vector<256x16xf32>
    %cst_6 = arith.constant dense<0.000000e+00> : vector<8x16xf32>
    %6 = tpu.matmul %4, %5, %cst_6 {dimension_numbers = #tpu.dot_dimension_numbers<[1], [0], [0], [1], [0, 0, 1, 1], [], []>} : vector<8x256xf32>, vector<256x16xf32>, vector<8x16xf32> -> vector<8x16xf32>
    %c0_7 = arith.constant 0 : index
    %c0_8 = arith.constant 0 : index
    %7 = vector.load %arg5[%c0_7, %c0_8] : memref<1x16xf32, #tpu.memory_space<vmem>>, vector<1x16xf32>
    %8 = vector.broadcast %7 : vector<1x16xf32> to vector<8x16xf32>
    %9 = arith.mulf %6, %8 : vector<8x16xf32>
    %c0_9 = arith.constant 0 : index
    %c0_10 = arith.constant 0 : index
    %10 = vector.load %arg6[%c0_9, %c0_10] : memref<8x16xf32, #tpu.memory_space<vmem>>, vector<8x16xf32>
    tpu.vector_store %arg6[%c0_9, %c0_10], %9 {strides = array<i32>} : memref<8x16xf32, #tpu.memory_space<vmem>>, vector<8x16xf32>,
    return
  }
  func.func @transform_0(%arg0: i32, %arg1: i32) -> (i32, i32) {
    %c0_i32 = arith.constant 0 : i32
    %c0_i32_0 = arith.constant 0 : i32
    return %arg0, %c0_i32 : i32, i32
  }
  func.func @transform_1(%arg0: i32, %arg1: i32) -> (i32, i32) {
    %c0_i32 = arith.constant 0 : i32
    %c0_i32_0 = arith.constant 0 : i32
    return %c0_i32, %arg1 : i32, i32
  }
  func.func @transform_2(%arg0: i32, %arg1: i32) -> (i32, i32) {
    %c0_i32 = arith.constant 0 : i32
    return %arg1, %arg1 : i32, i32
  }
  func.func @transform_3(%arg0: i32, %arg1: i32) -> (i32, i32) {
    %c0_i32 = arith.constant 0 : i32
    %c0_i32_0 = arith.constant 0 : i32
    return %c0_i32, %arg1 : i32, i32
  }
  func.func @transform_4(%arg0: i32, %arg1: i32) -> (i32, i32) {
    %c0_i32 = arith.constant 0 : i32
    return %arg0, %arg1 : i32, i32
  }
}

</mosaic_0001>

<bundles_post_ra>
// kernel: tpu_custom_call.1
= control target key start
LH: loop header
LB: loop body
LE: loop exit
PB: predicated region body
PF: predicated region fallthrough
CT: control target
= control target key end

     0   :  { %9 = vsyncpa [#allocation3], 0  ;;  %s1481_s0 = inlined_call_operand.vmem [shape: bf16[256,64], index: 0, kind: input, shape index: {}]   ;;  %s1482_s1 = inlined_call_operand.vmem [shape: bf16[64,256], index: 1, kind: input, shape index: {}]   ;;  %s1483_s2 = inlined_call_operand.vmem [shape: f32[256,16], index: 2, kind: input, shape index: {}]   ;;  %s1484_s3 = inlined_call_operand.vmem [shape: f32[1,16], index: 3, kind: input, shape index: {}]   ;;  %s1485_s4 = inlined_call_operand.hbm [shape: f32[16,16], index: 4, kind: output, shape index: {}]  }
   0x1   :  { %11 = vsyncpa [#allocation3 + $0x1], 0  ;;  %s1213_s15 = smov 0   ;;  %s1215_s16 = smov 0  }
   0x2   :  { %s1217_s17 = smov 0   ;;  %s1219_s18 = smov 0  }
   0x3   :  { %s1221_s19 = smov 0   ;;  %s1223_s20 = smov 0  }
   0x4 LB: > { %s915_s21 = sadd.s32 4294967295, %s1184_s20   ;;  %s916_s22 = sadd.s32 4294967294, %s1184_s20   ;;  %s1184_s20 = sphi %s1223_s20, %s17_s20   ;;  %s1180_s19 = sphi %s1221_s19, %s1492_s19   ;;  %s1176_s18 = sphi %s1219_s18, %s1491_s18   ;;  %s1172_s17 = sphi %s1217_s17, %s1490_s17   ;;  %s1168_s16 = sphi %s1215_s16, %s1489_s16   ;;  %s1164_s15 = sphi %s1213_s15, %s1488_s15  }
   0x5   : > { %s29_s23 = sadd.s32 1, %s1180_s19  ;;  %s144_s24 = sadd.s32 1, %s1172_s17 }
   0x6   : > { %p31_p0 = scmp.ge.s32.totalorder %s29_s23, 2  ;;  %p154_p1 = scmp.ne.s32.totalorder %s1172_s17, %s1168_s16 }
   0x7   : > { %p155_p2 = scmp.eq.s32.totalorder %s915_s21, 1  ;;  %p160_p3 = scmp.ne.s32.totalorder %s1168_s16, %s1164_s15 }
   0x8   : > { %s1494_s23 = smov (%p31_p0, %s29_s23), 0  ;;  %p161_p5 = scmp.eq.s32.totalorder %s916_s22, 1 }
   0x9   : > { %p1253_p4 = por %p155_p2, %p154_p1  ;;  %s139_s26 = ssub.s32 %s1180_s19, %s1494_s23 }
   0xa   : > { %p922_p6 = scmp.ge.s32.totalorder %s1184_s20, 1  ;;  %p142_p7 = scmp.eq.s32.totalorder %s139_s26, 0 }
   0xb   : > { %p1260_p8 = por %p161_p5, %p160_p3  ;;  %p215_p9 = scmp.lt.s32.totalorder %s1184_s20, 3 }
   0xc   : > { %s1266_s28 = scalar_select %p142_p7, %s1172_s17, %s144_s24  }
   0xd   : > { %p216_p10 = pnand %p922_p6, %p215_p9 }
   0xe   : > { %v1086_v0 = vld [vmem:[%s1482_s1 + $0x4] ss:$8 sps:$4 sm:$0xff] (!%p216_p10)   ;;  %s924_s5 = sshll.u32 (!%p216_p10), %s1176_s18, 4  ;;  %v1088_v1 = vld [vmem:[%s1482_s1] ss:$8 sps:$4 sm:$0xff] (!%p216_p10)   ;;  %v1186_v2 = vmov (!%p216_p10), 0  }
   0xf   : > { %219 = sbr.rel (%p216_p10) target bundleno = 522 (0x20a), region = 36  ;;  %443 = vmatprep.mubr.bf16.mxu0 (!%p216_p10), %v1186_v2  ;;  %483 = vmatprep.mubr.bf16.mxu1 (!%p216_p10), %v1186_v2  ;;  %p258_p11 = scmp.lt.s32.totalorder (!%p216_p10), %s924_s5, 31  ;;  %v1089_v3 = vld [vmem:[%s1482_s1 + $0x14] ss:$8 sps:$4 sm:$0xff] (!%p216_p10)   ;;  %v1091_v4 = vld [vmem:[%s1482_s1 + $0x10] ss:$8 sps:$4 sm:$0xff] (!%p216_p10)  }
  0x10   : > { %411 = vmatprep.subr.bf16.mxu0 (!%p216_p10), %v1086_v0  ;;  %1022 = vmatprep.subr.bf16.mxu1 (!%p216_p10), %v1086_v0  ;;  %v1092_v5 = vld [vmem:[%s1482_s1 + $0x24] ss:$8 sps:$4 sm:$0xff] (!%p216_p10)   ;;  %v1094_v6 = vld [vmem:[%s1482_s1 + $0x20] ss:$8 sps:$4 sm:$0xff] (!%p216_p10)   ;;  %v1095_v7 = vld [vmem:[%s1482_s1 + $0x34] ss:$8 sps:$4 sm:$0xff] (!%p216_p10)  }
  0x11   : > { %412 = vmatpush1.bf16.msra.mxu0 (!%p216_p10), %v1088_v1  ;;  %1026 = vmatpush1.bf16.msra.mxu1 (!%p216_p10), %v1088_v1  ;;  %v1097_v8 = vld [vmem:[%s1482_s1 + $0x30] ss:$8 sps:$4 sm:$0xff] (!%p216_p10)   ;;  %vm386_vm0 = vcmask (!%p216_p10), 523264   ;;  %v652_v17 = vld [vmem:[%s1483_s2 + $0x80] sm:$0xff] (!%p216_p10)  ;;  %v653_v18 = vld [vmem:[%s1483_s2 + $0x88] sm:$0xff] (!%p216_p10)  ;;  %vm684_vm1 = vcmask (!%p216_p10), 1041409  }
  0x12   : > { %413 = vmatprep.subr.bf16.mxu0 (!%p216_p10), %v1089_v3  ;;  %1023 = vmatprep.subr.bf16.mxu1 (!%p216_p10), %v1089_v3  ;;  %v990_v19 = vpack.c.bf16 (!%p216_p10), %v653_v18, %v652_v17  ;;  %v636_v20 = vld [vmem:[%s1483_s2] sm:$0xff] (!%p216_p10)  ;;  %v637_v21 = vld [vmem:[%s1483_s2 + $0x8] sm:$0xff] (!%p216_p10)  ;;  %v654_v23 = vld [vmem:[%s1483_s2 + $0x90] sm:$0xff] (!%p216_p10)  ;;  %vm686_vm2 = vcmask (!%p216_p10), 1042434   ;;  %vm688_vm3 = vcmask (!%p216_p10), 1043459   ;;  %vm690_vm4 = vcmask (!%p216_p10), 1044484  }
  0x13   : > { %v992_v22 = vpack.c.bf16 (!%p216_p10), %v637_v21, %v636_v20  ;;  %v655_v24 = vld [vmem:[%s1483_s2 + $0x98] sm:$0xff] (!%p216_p10)  ;;  %v638_v26 = vld [vmem:[%s1483_s2 + $0x10] sm:$0xff] (!%p216_p10)  ;;  %v656_v29 = vld [vmem:[%s1483_s2 + $0xa0] sm:$0xff] (!%p216_p10)  ;;  %vm692_vm5 = vcmask (!%p216_p10), 1045509   ;;  %vm694_vm6 = vcmask (!%p216_p10), 1046534   ;;  %vm696_vm7 = vcmask (!%p216_p10), 1047559  }
  0x14   : > { %v994_v25 = vpack.c.bf16 (!%p216_p10), %v655_v24, %v654_v23  ;;  %v639_v27 = vld [vmem:[%s1483_s2 + $0x18] sm:$0xff] (!%p216_p10)  ;;  %v657_v30 = vld [vmem:[%s1483_s2 + $0xa8] sm:$0xff] (!%p216_p10)  ;;  %v640_v32 = vld [vmem:[%s1483_s2 + $0x20] sm:$0xff] (!%p216_p10)  ;;  %s254_s8 = sand.u32 (!%p216_p10), 1, %s1168_s16   ;;  %s952_s12 = sshll.u32 (!%p216_p10), %s1176_s18, 7  ;;  %vm785_vm8 = vcmask (!%p216_p10), 130048  }
  0x15   : > { %414 = vmatpush1.bf16.msra.mxu0 (!%p216_p10), %v1091_v4  ;;  %1027 = vmatpush1.bf16.msra.mxu1 (!%p216_p10), %v1091_v4  ;;  %v996_v28 = vpack.c.bf16 (!%p216_p10), %v639_v27, %v638_v26  ;;  %v998_v31 = vpack.c.bf16 (!%p216_p10), %v657_v30, %v656_v29  ;;  %v641_v33 = vld [vmem:[%s1483_s2 + $0x28] sm:$0xff] (!%p216_p10)  ;;  %v658_v35 = vld [vmem:[%s1483_s2 + $0xb0] sm:$0xff] (!%p216_p10)  ;;  %v659_v36 = vld [vmem:[%s1483_s2 + $0xb8] sm:$0xff] (!%p216_p10)  ;;  %s923_s9 = sshll.u32 (!%p216_p10), %s254_s8, 3  ;;  %s788_s26 = scalar_lea.sflag (!%p216_p10), [#allocation3], %s254_s8 }
  0x16   : > { %s1496_s5 = smov (!%p258_p11, %s924_s5), 31  ;;  %415 = vmatprep.subr.bf16.mxu0 %v1092_v5  ;;  %1024 = vmatprep.subr.bf16.mxu1 %v1092_v5  ;;  %v1000_v34 = vpack.c.bf16 %v641_v33, %v640_v32  ;;  %v1002_v37 = vpack.c.bf16 %v659_v36, %v658_v35  ;;  %v642_v38 = vld [vmem:[%s1483_s2 + $0x30] sm:$0xff]  ;;  %v643_v39 = vld [vmem:[%s1483_s2 + $0x38] sm:$0xff]  ;;  %v660_v41 = vld [vmem:[%s1483_s2 + $0xc0] sm:$0xff]  ;;  %s256_s13 = scalar_lea.vmem [#allocation2], %s923_s9 }
  0x17   : > { %s925_s14 = sshll.u32 %s1496_s5, 2  ;;  %v1004_v40 = vpack.c.bf16 %v643_v39, %v642_v38  ;;  %v661_v42 = vld [vmem:[%s1483_s2 + $0xc8] sm:$0xff]  ;;  %v644_v44 = vld [vmem:[%s1483_s2 + $0x40] sm:$0xff]  ;;  %v662_v47 = vld [vmem:[%s1483_s2 + $0xd0] sm:$0xff]  ;;  %s1187_s18 = smov [#allocation2]  }
  0x18   : > { %s1287_s24 = scalar_lea.vmem %s1481_s0, %s925_s14  ;;  %v1006_v43 = vpack.c.bf16 %v661_v42, %v660_v41  ;;  %v645_v45 = vld [vmem:[%s1483_s2 + $0x48] sm:$0xff]  ;;  %v663_v48 = vld [vmem:[%s1483_s2 + $0xd8] sm:$0xff]  ;;  %v646_v50 = vld [vmem:[%s1483_s2 + $0x50] sm:$0xff]  ;;  %s802_s14 = sshll.u32 %s256_s13, 4  ;;  %s1436_s14 = int_to_ptr.vmem [resolvable:$true] %s802_s14 }
  0x19   : > { %416 = vmatpush1.bf16.msra.mxu0 %v1094_v6  ;;  %1028 = vmatpush1.bf16.msra.mxu1 %v1094_v6  ;;  %v1098_v9 = vld [vmem:[%s1287_s24] sm:$0xff]   ;;  %v1100_v11 = vld [vmem:[%s1287_s24 + $0x8] sm:$0xff]   ;;  %v1102_v13 = vld [vmem:[%s1287_s24 + $0x10] sm:$0xff]   ;;  %v1008_v46 = vpack.c.bf16 %v645_v45, %v644_v44  ;;  %v1010_v49 = vpack.c.bf16 %v663_v48, %v662_v47  ;;  %s1106_s29 = scalar_lea.vmem %s1436_s14, 128  ;;  %s1110_s30 = sshll.u32 %s1187_s18, 4  ;;  %s1111_s30 = int_to_ptr.vmem [resolvable:$false] %s1110_s30 }
  0x1a   : > { %417 = vmatprep.subr.bf16.mxu0 %v1095_v7  ;;  %1025 = vmatprep.subr.bf16.mxu1 %v1095_v7  ;;  %v1099_v10 = vld [vmem:[%s1287_s24 + $0x20] sm:$0xff]   ;;  %v1101_v12 = vld [vmem:[%s1287_s24 + $0x28] sm:$0xff]   ;;  %v1103_v14 = vld [vmem:[%s1287_s24 + $0x30] sm:$0xff]   ;;  %p1107_p12 = scmp.ne.s32.totalorder %s1436_s14, %s1106_s29  ;;  %s1112_s6 = scalar_lea.vmem %s1111_s30, 256 }
  0x1b   : > { %v1104_v15 = vld [vmem:[%s1287_s24 + $0x18] sm:$0xff]   ;;  %v664_v53 = vld [vmem:[%s1483_s2 + $0xe0] sm:$0xff]  ;;  %v665_v54 = vld [vmem:[%s1483_s2 + $0xe8] sm:$0xff]  ;;  %p1113_p1 = scmp.lt.s32.totalorder %s1436_s14, %s1111_s30  ;;  %p1114_p2 = scmp.lt.s32.totalorder %s1112_s6, %s1106_s29 }
  0x1c   : > { %v1105_v16 = vld [vmem:[%s1287_s24 + $0x38] sm:$0xff]   ;;  %v1014_v55 = vpack.c.bf16 %v665_v54, %v664_v53  ;;  %v648_v56 = vld [vmem:[%s1483_s2 + $0x60] sm:$0xff]  ;;  %v649_v57 = vld [vmem:[%s1483_s2 + $0x68] sm:$0xff]  ;;  %s1434_s24 = scalar_lea.hbm %s1485_s4, %s952_s12  ;;  %p1108_p13 = pnand %p1107_p12, %p1253_p4 }
  0x1d   : > { %418 = vmatpush1.bf16.msra.mxu0 %v1097_v8  ;;  %1029 = vmatpush1.bf16.msra.mxu1 %v1097_v8  ;;  %v647_v51 = vld [vmem:[%s1483_s2 + $0x58] sm:$0xff]  ;;  %v1016_v58 = vpack.c.bf16 %v649_v57, %v648_v56  ;;  %v666_v59 = vld [vmem:[%s1483_s2 + $0xf0] sm:$0xff]  ;;  %p1115_p3 = por %p1114_p2, %p1113_p1 }
  0x1e   : > { %991 = vmatprep.subr.bf16.mxu1 %v990_v19  ;;  %v1012_v52 = vpack.c.bf16 %v647_v51, %v646_v50  ;;  %v667_v60 = vld [vmem:[%s1483_s2 + $0xf8] sm:$0xff]  ;;  %v650_v61 = vld [vmem:[%s1483_s2 + $0x70] sm:$0xff]  ;;  %p1109_p0 = pneg %p1108_p13 }
  0x1f   : > { %v1018_v62 = vpack.c.bf16 %v667_v60, %v666_v59  ;;  %v651_v63 = vld [vmem:[%s1483_s2 + $0x78] sm:$0xff] }
  0x20   : > { %942 = vmatmul.mubr.msk.bf16.vlgmr.msra.gmra.mrb[0].mxu0 %vm386_vm0, %v1098_v9  ;;  %946 = vmatmul.mubr.msk.bf16.vlgmr.msra.gmra.mrb[0].mxu1 %vm386_vm0, %v1099_v10  ;;  %v1020_v0 = vpack.c.bf16 %v651_v63, %v650_v61  ;;  %p1116_p5 = pnand %p1115_p3, %p1109_p0 }
  0x21   : > { %453 = vmatprep.mubr.bf16.mxu0 %v1186_v2  ;;  %493 = vmatprep.mubr.bf16.mxu1 %v1186_v2 }
  0x22   : > { %993 = vmatpush3.bf16.msra.mxu1 %v992_v22 }
  0x23   : > { %995 = vmatprep.subr.bf16.mxu1 %v994_v25 }
  0x26   : > { %997 = vmatpush3.bf16.msra.mxu1 %v996_v28 }
  0x27   : > { %999 = vmatprep.subr.bf16.mxu1 %v998_v31 }
  0x28   : > { %943 = vmatmul.mubr.msk.bf16.gmra.mrb[4].mxu0 %vm386_vm0, %v1100_v11  ;;  %947 = vmatmul.mubr.msk.bf16.gmra.mrb[4].mxu1 %vm386_vm0, %v1101_v12 }
  0x29   : > { %463 = vmatprep.mubr.bf16.mxu0 %v1186_v2  ;;  %503 = vmatprep.mubr.bf16.mxu1 %v1186_v2 }
  0x2a   : > { %1001 = vmatpush3.bf16.msra.mxu1 %v1000_v34 }
  0x2b   : > { %1003 = vmatprep.subr.bf16.mxu1 %v1002_v37 }
  0x2e   : > { %1005 = vmatpush3.bf16.msra.mxu1 %v1004_v40 }
  0x2f   : > { %1007 = vmatprep.subr.bf16.mxu1 %v1006_v43 }
  0x30   : > { %944 = vmatmul.mubr.msk.bf16.gmra.mrb[8].mxu0 %vm386_vm0, %v1102_v13  ;;  %948 = vmatmul.mubr.msk.bf16.gmra.mrb[8].mxu1 %vm386_vm0, %v1103_v14 }
  0x31   : > { %473 = vmatprep.mubr.bf16.mxu0 %v1186_v2  ;;  %513 = vmatprep.mubr.bf16.mxu1 %v1186_v2 }
  0x32   : > { %1009 = vmatpush3.bf16.msra.mxu1 %v1008_v46 }
  0x33   : > { %1011 = vmatprep.subr.bf16.mxu1 %v1010_v49 }
  0x36   : > { %1013 = vmatpush3.bf16.msra.mxu1 %v1012_v52 }
  0x37   : > { %1015 = vmatprep.subr.bf16.mxu1 %v1014_v55 }
  0x38   : > { %945 = vmatmul.mubr.msk.bf16.gmra.mrb[12].mxu0 %vm386_vm0, %v1104_v15  ;;  %949 = vmatmul.mubr.msk.bf16.gmra.mrb[12].mxu1 %vm386_vm0, %v1105_v16 }
  0x3a   : > { %1017 = vmatpush3.bf16.msra.mxu1 %v1016_v58 }
  0x3b   : > { %1019 = vmatprep.subr.bf16.mxu1 %v1018_v62 }
  0x3e   : > { %1021 = vmatpush3.bf16.msra.mxu1 %v1020_v0 }
  0xf3   : > { %v445_v1 = vpop.f32.mrb[0].mxu0  ;;  %v485_v2 = vpop.f32.mrb[0].mxu1 }
  0xf4   : > { %v447_v3 = vpop.f32.mrb[1].mxu0  ;;  %v487_v4 = vpop.f32.mrb[1].mxu1 }
  0xf5   : > { %v449_v5 = vpop.f32.mrb[2].mxu0  ;;  %v489_v6 = vpop.f32.mrb[2].mxu1 }
  0xf6   : > { %v524_v7 = vmax.f32 %v445_v1, %v449_v5  ;;  %v580_v8 = vmax.f32 %v485_v2, %v489_v6  ;;  %v451_v9 = vpop.f32.mrb[3].mxu0  ;;  %v491_v10 = vpop.f32.mrb[3].mxu1 }
  0xf7   : > { %v531_v11 = vmax.f32 %v447_v3, %v451_v9  ;;  %v587_v12 = vmax.f32 %v487_v4, %v491_v10 }
  0xf8   : > { %v525_v13 = vrot.slane %v524_v7, 4  ;;  %v581_v31 = vrot.slane %v580_v8, 4 }
  0xf9   : > { %v532_v14 = vrot.slane %v531_v11, 4  ;;  %v588_v34 = vrot.slane %v587_v12, 4 }
  0xfa   : > { %v526_v15 = vmax.f32 %v524_v7, %v525_v13  ;;  %v582_v41 = vmax.f32 %v580_v8, %v581_v31 }
  0xfb   : > { %v533_v16 = vmax.f32 %v531_v11, %v532_v14  ;;  %v455_v17 = vpop.f32.mrb[4].mxu0  ;;  %v495_v18 = vpop.f32.mrb[4].mxu1  ;;  %v589_v46 = vmax.f32 %v587_v12, %v588_v34 }
  0xfc   : > { %v457_v19 = vpop.f32.mrb[5].mxu0  ;;  %v497_v20 = vpop.f32.mrb[5].mxu1  ;;  %v527_v21 = vrot.slane %v526_v15, 2  ;;  %v583_v60 = vrot.slane %v582_v41, 2 }
  0xfd   : > { %v459_v22 = vpop.f32.mrb[6].mxu0  ;;  %v499_v23 = vpop.f32.mrb[6].mxu1  ;;  %v534_v28 = vrot.slane %v533_v16, 2  ;;  %v590_v0 = vrot.slane %v589_v46, 2 }
  0xfe   : > { %v538_v24 = vmax.f32 %v455_v17, %v459_v22  ;;  %v594_v25 = vmax.f32 %v495_v18, %v499_v23  ;;  %v461_v26 = vpop.f32.mrb[7].mxu0  ;;  %v501_v27 = vpop.f32.mrb[7].mxu1  ;;  %v528_v33 = vmax.f32 %v526_v15, %v527_v21  ;;  %v1410_v14 = vmax.f32 %v582_v41, %v583_v60 }
  0xff   : > { %v545_v29 = vmax.f32 %v457_v19, %v461_v26  ;;  %v601_v30 = vmax.f32 %v497_v20, %v501_v27  ;;  %v535_v37 = vmax.f32 %v533_v16, %v534_v28  ;;  %v591_v20 = vmax.f32 %v589_v46, %v590_v0 }
 0x100   : > { %v539_v32 = vrot.slane %v538_v24, 4  ;;  %v529_v45 = vrot.slane %v528_v33, 1  ;;  %v595_v51 = vrot.slane %v594_v25, 4 }
 0x101   : > { %v546_v35 = vrot.slane %v545_v29, 4  ;;  %v536_v56 = vrot.slane %v535_v37, 1  ;;  %v602_v62 = vrot.slane %v601_v30, 4 }
 0x102   : > { %v540_v36 = vmax.f32 %v538_v24, %v539_v32  ;;  %v530_v4 = vmax.f32 %v528_v33, %v529_v45  ;;  %v596_v9 = vmax.f32 %v594_v25, %v595_v51 }
 0x103   : > { %v547_v38 = vmax.f32 %v545_v29, %v546_v35  ;;  %v465_v39 = vpop.f32.mrb[8].mxu0  ;;  %v505_v40 = vpop.f32.mrb[8].mxu1  ;;  %v537_v8 = vmax.f32 %v535_v37, %v536_v56  ;;  %v603_v16 = vmax.f32 %v601_v30, %v602_v62 }
 0x104   : > { %v541_v42 = vrot.slane %v540_v36, 2  ;;  %v467_v43 = vpop.f32.mrb[9].mxu0  ;;  %v507_v44 = vpop.f32.mrb[9].mxu1  ;;  %v597_v33 = vrot.slane %v596_v9, 2 }
 0x105   : > { %v548_v47 = vrot.slane %v547_v38, 2  ;;  %v469_v48 = vpop.f32.mrb[10].mxu0  ;;  %v509_v49 = vpop.f32.mrb[10].mxu1 }
 0x106   : > { %v542_v50 = vmax.f32 %v540_v36, %v541_v42  ;;  %v552_v52 = vmax.f32 %v465_v39, %v469_v48  ;;  %v608_v53 = vmax.f32 %v505_v40, %v509_v49  ;;  %v471_v54 = vpop.f32.mrb[11].mxu0  ;;  %v511_v55 = vpop.f32.mrb[11].mxu1  ;;  %v604_v36 = vrot.slane %v603_v16, 2 }
 0x107   : > { %v549_v57 = vmax.f32 %v547_v38, %v548_v47  ;;  %v559_v58 = vmax.f32 %v467_v43, %v471_v54  ;;  %v615_v59 = vmax.f32 %v507_v44, %v511_v55  ;;  %v598_v48 = vmax.f32 %v596_v9, %v597_v33 }
 0x108   : > { %v543_v61 = vrot.slane %v542_v50, 1  ;;  %v553_v63 = vrot.slane %v552_v52, 4  ;;  %v609_v2 = vrot.slane %v608_v53, 4 }
 0x109   : > { %v550_v1 = vrot.slane %v549_v57, 1  ;;  %v560_v3 = vrot.slane %v559_v58, 4  ;;  %v616_v7 = vrot.slane %v615_v59, 4 }
 0x10a   : > { %v544_v5 = vmax.f32 %v542_v50, %v543_v61  ;;  %v554_v6 = vmax.f32 %v552_v52, %v553_v63  ;;  %v610_v22 = vmax.f32 %v608_v53, %v609_v2  ;;  %v605_v52 = vmax.f32 %v603_v16, %v604_v36 }
 0x10b   : > { %v551_v10 = vmax.f32 %v549_v57, %v550_v1  ;;  %v561_v11 = vmax.f32 %v559_v58, %v560_v3  ;;  %v475_v12 = vpop.f32.mrb[12].mxu0  ;;  %v515_v13 = vpop.f32.mrb[12].mxu1  ;;  %v617_v27 = vmax.f32 %v615_v59, %v616_v7  ;;  %v585_v63 = vrot.slane %v1410_v14, 1 }
 0x10c   : > { %v685_v15 = vsel %vm684_vm1, %v544_v5, %v530_v4  ;;  %v555_v17 = vrot.slane %v554_v6, 2  ;;  %v477_v18 = vpop.f32.mrb[13].mxu0  ;;  %v517_v19 = vpop.f32.mrb[13].mxu1  ;;  %v611_v40 = vrot.slane %v610_v22, 2  ;;  %v592_v2 = vrot.slane %v591_v20, 1 }
 0x10d   : > { %v698_v21 = vsel %vm684_vm1, %v551_v10, %v537_v8  ;;  %v562_v23 = vrot.slane %v561_v11, 2  ;;  %v479_v24 = vpop.f32.mrb[14].mxu0  ;;  %v519_v26 = vpop.f32.mrb[14].mxu1  ;;  %v618_v45 = vrot.slane %v617_v27, 2  ;;  %v599_v3 = vrot.slane %v598_v48, 1 }
 0x10e   : > { %v556_v25 = vmax.f32 %v554_v6, %v555_v17  ;;  %v566_v28 = vmax.f32 %v475_v12, %v479_v24  ;;  %v622_v29 = vmax.f32 %v515_v13, %v519_v26  ;;  %v481_v31 = vpop.f32.mrb[15].mxu0  ;;  %v521_v32 = vpop.f32.mrb[15].mxu1  ;;  %v612_v56 = vmax.f32 %v610_v22, %v611_v40 }
 0x10f   : > { %v563_v34 = vmax.f32 %v561_v11, %v562_v23  ;;  %v573_v35 = vmax.f32 %v477_v18, %v481_v31  ;;  %v629_v30 = vmax.f32 %v517_v19, %v521_v32  ;;  %v619_v60 = vmax.f32 %v617_v27, %v618_v45 }
 0x110   : > { %v557_v37 = vrot.slane %v556_v25, 1  ;;  %v567_v38 = vrot.slane %v566_v28, 4  ;;  %v623_v39 = vrot.slane %v622_v29, 4  ;;  %v606_v5 = vrot.slane %v605_v52, 1 }
 0x111   : > { %v564_v41 = vrot.slane %v563_v34, 1  ;;  %v574_v42 = vrot.slane %v573_v35, 4  ;;  %v630_v43 = vrot.slane %v629_v30, 4  ;;  %v613_v6 = vrot.slane %v612_v56, 1 }
 0x112   : > { %v558_v44 = vmax.f32 %v556_v25, %v557_v37  ;;  %v568_v46 = vmax.f32 %v566_v28, %v567_v38  ;;  %v624_v47 = vmax.f32 %v622_v29, %v623_v39  ;;  %v620_v8 = vrot.slane %v619_v60, 1 }
 0x113   : > { %v565_v49 = vmax.f32 %v563_v34, %v564_v41  ;;  %v575_v50 = vmax.f32 %v573_v35, %v574_v42  ;;  %v631_v51 = vmax.f32 %v629_v30, %v630_v43  ;;  %v586_v11 = vmax.f32 %v1410_v14, %v585_v63  ;;  %v950_v34 = vld [vmem:[%s1484_s3] ss:$0 sm:$0xff] }
 0x114   : > { %v687_v53 = vsel %vm686_vm2, %v558_v44, %v685_v15  ;;  %v569_v54 = vrot.slane %v568_v46, 2  ;;  %v625_v55 = vrot.slane %v624_v47, 2  ;;  %v593_v15 = vmax.f32 %v591_v20, %v592_v2 }
 0x115   : > { %v699_v57 = vsel %vm686_vm2, %v565_v49, %v698_v21  ;;  %v576_v58 = vrot.slane %v575_v50, 2  ;;  %v632_v59 = vrot.slane %v631_v51, 2  ;;  %v600_v16 = vmax.f32 %v598_v48, %v599_v3 }
 0x116   : > { %v570_v61 = vmax.f32 %v568_v46, %v569_v54  ;;  %v626_v62 = vmax.f32 %v624_v47, %v625_v55  ;;  %v607_v18 = vmax.f32 %v605_v52, %v606_v5  ;;  %v614_v19 = vmax.f32 %v612_v56, %v613_v6 }
 0x117   : > { %v577_v0 = vmax.f32 %v575_v50, %v576_v58  ;;  %v633_v1 = vmax.f32 %v631_v51, %v632_v59  ;;  %v621_v23 = vmax.f32 %v619_v60, %v620_v8 }
 0x118   : > { %v571_v4 = vrot.slane %v570_v61, 1  ;;  %v627_v10 = vrot.slane %v626_v62, 1 }
 0x119   : > { %v578_v7 = vrot.slane %v577_v0, 1  ;;  %v634_v13 = vrot.slane %v633_v1, 1 }
 0x11a   : > { %v572_v9 = vmax.f32 %v570_v61, %v571_v4  ;;  %v628_v24 = vmax.f32 %v626_v62, %v627_v10 }
 0x11b   : > { %v579_v12 = vmax.f32 %v577_v0, %v578_v7  ;;  %v635_v25 = vmax.f32 %v633_v1, %v634_v13 }
 0x11c   : > { %v689_v17 = vsel %vm688_vm3, %v572_v9, %v687_v53 }
 0x11d   : > { %v700_v21 = vsel %vm688_vm3, %v579_v12, %v699_v57  ;;  %v691_v22 = vsel %vm690_vm4, %v586_v11, %v689_v17 }
 0x11e   : > { %v701_v14 = vsel %vm690_vm4, %v593_v15, %v700_v21  ;;  %v693_v26 = vsel %vm692_vm5, %v600_v16, %v691_v22 }
 0x11f   : > { %v702_v20 = vsel %vm692_vm5, %v607_v18, %v701_v14  ;;  %v695_v27 = vsel %vm694_vm6, %v614_v19, %v693_v26 }
 0x120   : > { %v703_v28 = vsel %vm694_vm6, %v621_v23, %v702_v20  ;;  %v697_v29 = vsel %vm696_vm7, %v628_v24, %v695_v27 }
 0x121   : > { %v704_v31 = vsel %vm696_vm7, %v635_v25, %v703_v28 }
 0x122   : > { %771 = vmatprep.mubr.f32.mxu1 %v704_v31 }
 0x123   : > { %772 = vmatmul.mubr.f32.vlgmr.msra.gmra.mrb[16].mxu1 %v697_v29 }
 0x1f6   : > { %v987_v32 = vpop.f32.mrb[16].mxu1 }
 0x1f7   : > { %v988_v33 = vpop.f32.mrb[17].mxu1 }
 0x1f8   : > { %v989_v35 = vadd.f32 %v988_v33, %v987_v32 }
 0x1fa   : > { %v784_v30 = vmul.f32 %v989_v35, %v950_v34 }
 0x1fc   : > { %786 = vst.msk [vmem:[%s256_s13] sm:$0xff] %vm785_vm8, %v784_v30 }
 0x1fd   : > { %1119 = shalt.err (!%p1116_p5)
}
 0x1fe   : > { %s1120_s5 = scalar_lea.hbm %s1434_s24, 128  ;;  %s1124_s9 = scalar_lea.hbm %s1485_s4, 256 }
 0x1ff   : > { %p1121_p6 = scmp.ne.s32.totalorder %s1434_s24, %s1120_s5  ;;  %p1125_p10 = scmp.lt.u32.totalorder %s1434_s24, %s1485_s4 }
 0x200   : > { %p1126_p11 = scmp.lt.u32.totalorder %s1124_s9, %s1120_s5  ;;  %p1128_p13 = scmp.lt.u32.totalorder %s1120_s5, %s1434_s24 }
 0x201   : > { %p1122_p7 = pnand %p1121_p6, %p1253_p4 }
 0x202   : > { %p1127_p12 = por %p1126_p11, %p1125_p10 }
 0x203   : > { %p1123_p9 = pneg %p1122_p7 }
 0x204   : > { %p1129_p0 = por %p1128_p13, %p1127_p12 }
 0x206   : > { %p1130_p1 = pnand %p1129_p0, %p1123_p9 }
 0x208   : > { %1133 = shalt.err (!%p1130_p1)
}
 0x209   : > { %1030 = dma.vmem_to_hbm [thread:$0]  (%p1253_p4), %s1436_s14, 128, %s1434_s24, %s788_s26  }
 0x20a PF: > { %p1036_p2 = scmp.ge.s32.totalorder %s1184_s20, 2  ;;  %s814_s12 = sand.u32 1, %s1164_s15  }
 0x20b   : > { %s815_s13 = scalar_lea.sflag [#allocation3], %s814_s12 }
 0x20c   : > { %p1033_p3 = pnand %p1036_p2, %p1260_p8 }
 0x20e   : > { %1159 = dma.done.wait (!%p1033_p3), %s815_s13, 128  }
 0x20f   : > { %1161 = vsyncadd (!%p1033_p3), %s815_s13, 4294967168  ;;  %s17_s20 = sadd.s32 1, %s1184_s20   ;;  %s1488_s15 = smov %s1168_s16 }
 0x210   : > { %p14_p5 = scmp.ge.s32.totalorder %s17_s20, 4   ;;  %s1489_s16 = smov %s1172_s17 }
 0x211   : > { %s1490_s17 = smov %s1266_s28  ;;  %s1491_s18 = smov %s1180_s19 }
 0x212   : > { %s1492_s19 = smov %s1494_s23  ;;  %16 = sbr.rel (!%p14_p5) target bundleno = 4 (0x4), region = 80 }
 0x219   :  { %820 = vsyncpa [#allocation3], 1 }
 0x21a   :  { %822 = vsyncpa [#allocation3 + $0x1], 1 }

</bundles_post_ra>
